<compile_context>
chip_gen: v5e
topology: v5e:2x2
jax: 0.10.0
libtpu: 0.0.40
codegen_flags: <defaults>
</compile_context>

<pallas_src>
import functools

import jax
import jax.numpy as jnp
from jax.experimental import pallas as pl
from jax.experimental.pallas import tpu as pltpu


def _depth_smooth_kernel(disp_ref, img_ref, mask_ref, dhalo_ref, ihalo_ref,
                         out_ref, *, h_total, tile_h):
    # Block shapes: disp/img/mask [1, 1, tile_h, W]; halos [1, 1, halo_h, W];
    # out [1, 1, 2] in SMEM.
    d = disp_ref[0, 0].astype(jnp.float32)      # [th, W]
    im = img_ref[0, 0].astype(jnp.float32)
    m = mask_ref[0, 0].astype(jnp.float32)
    th, _ = d.shape

    # Global row index of each local row; used as a *select* so ragged /
    # out-of-bounds rows of the last H tile never leak (even if they are NaN).
    row = (jax.lax.broadcasted_iota(jnp.int32, (th, 1), 0)
           + pl.program_id(1) * tile_h)                       # [th, 1]

    # ---- x term: |d[:, j] - d[:, j+1]| * exp(-|img[:, j] - img[:, j+1]|) * m
    #      for j = 0..W-2 (C == 1 -> channel mean is the identity).
    tx = (jnp.abs(d[:, :-1] - d[:, 1:])
          * jnp.exp(-jnp.abs(im[:, :-1] - im[:, 1:]))
          * m[:, :-1])
    sum_x = jnp.sum(jnp.where(row < h_total, tx, 0.0))

    # ---- y term, in-tile row pairs (local rows i / i+1).
    ty = (jnp.abs(d[:-1, :] - d[1:, :])
          * jnp.exp(-jnp.abs(im[:-1, :] - im[1:, :]))
          * m[:-1, :])
    sum_y = jnp.sum(jnp.where(row[:-1] < h_total - 1, ty, 0.0))

    # ---- y term at the tile seam: last local row vs. first row of the next
    #      H tile (delivered by the halo BlockSpec).  Masked out when this
    #      tile's last row is the image's last (or a ragged padding) row.
    d_nxt = dhalo_ref[0, 0][0:1, :].astype(jnp.float32)       # [1, W]
    i_nxt = ihalo_ref[0, 0][0:1, :].astype(jnp.float32)
    tb = (jnp.abs(d[th - 1:th, :] - d_nxt)
          * jnp.exp(-jnp.abs(im[th - 1:th, :] - i_nxt))
          * m[th - 1:th, :])
    last_row = pl.program_id(1) * tile_h + (th - 1)
    sum_y = sum_y + jnp.where(last_row < h_total - 1, jnp.sum(tb), 0.0)

    out_ref[0, 0, 0] = sum_x
    out_ref[0, 0, 1] = sum_y


def depth_smooth_loss(disp, img, mask, *, tile_h=None):
    """disp, img, mask: [B, 1, H, W]. Returns scalar f32 loss.

    disp/img may be f32 or bf16; mask may be f32/bf16/int8/bool.  All compute
    is performed in f32 inside the kernel (narrow input dtypes only reduce
    HBM traffic).
    """
    B, C, H, W = disp.shape
    assert C == 1 and img.shape == (B, 1, H, W) and mask.shape == (B, 1, H, W), (
        "DepthSmoothLoss kernel supports the documented [B, 1, H, W] layout")
    assert H >= 2 and W >= 2

    bpe = lambda a: jnp.dtype(a.dtype).itemsize

    # ---- H tile size: ~1 MiB of f32 per tile slab; multiple of 32 rows so
    #      f32 (8-row), bf16 (16-row) and int8/bool (32-row) inputs all tile
    #      legally.  Single full-dim tile when H is small.
    if tile_h is None:
        rows = (1 << 20) // max(4 * W, 1)
        tile_h = max(32, min(512, (rows // 32) * 32))
    else:
        tile_h = max(32, (int(tile_h) // 32) * 32)
    if tile_h >= H:
        tile_h, n_h = H, 1
    else:
        n_h = -(-H // tile_h)

    # ---- Halo block for the vertical-gradient seam: the first rows of the
    #      next H tile (only row 0 is used).  Sized to the dtype's minimum
    #      sublane tile so the halo BlockSpec is always legal.
    sub_unit = {4: 8, 2: 16, 1: 32}
    halo_unit = max(sub_unit.get(bpe(disp), 32), sub_unit.get(bpe(img), 32))
    halo_h = halo_unit if H >= halo_unit else H
    n_halo = -(-H // halo_h)
    halo_step = max(1, tile_h // halo_h)   # exact whenever n_h > 1 (tile_h % 32 == 0)

    def data_map(b, h):
        return (b, 0, h, 0)

    def halo_map(b, h):
        # First halo block of the *next* H tile; clamped in-bounds (the clamped
        # content is only reachable for rows that the validity mask removes).
        return (b, 0, jnp.minimum((h + 1) * halo_step, n_halo - 1), 0)

    kernel = functools.partial(_depth_smooth_kernel, h_total=H, tile_h=tile_h)

    # VMEM budget: double-buffered input blocks + halos + ~12 f32 temporaries.
    blk_elems = tile_h * W
    vmem_est = (2 * blk_elems * (bpe(disp) + bpe(img) + bpe(mask))
                + 2 * halo_h * W * (bpe(disp) + bpe(img))
                + 12 * blk_elems * 4)
    vmem_limit = int(min(48 << 20, max(32 << 20, vmem_est + (2 << 20))))

    n_elems = B * H * W
    cost = pl.CostEstimate(
        flops=14 * n_elems,
        transcendentals=2 * n_elems,
        bytes_accessed=(n_elems * (bpe(disp) + bpe(img) + bpe(mask))
                        + B * n_h * halo_h * W * (bpe(disp) + bpe(img))
                        + B * n_h * 2 * 4),
    )

    partial_sums = pl.pallas_call(
        kernel,
        out_shape=jax.ShapeDtypeStruct((B, n_h, 2), jnp.float32),
        grid=(B, n_h),
        in_specs=[
            pl.BlockSpec((1, 1, tile_h, W), data_map),
            pl.BlockSpec((1, 1, tile_h, W), data_map),
            pl.BlockSpec((1, 1, tile_h, W), data_map),
            pl.BlockSpec((1, 1, halo_h, W), halo_map),   # disp halo
            pl.BlockSpec((1, 1, halo_h, W), halo_map),   # img halo
        ],
        out_specs=pl.BlockSpec((1, 1, 2), lambda b, h: (b, h, 0),
                               memory_space=pltpu.MemorySpace.SMEM),
        compiler_params=pltpu.CompilerParams(
            dimension_semantics=("parallel", "parallel"),
            vmem_limit_bytes=vmem_limit,
        ),
        cost_estimate=cost,
    )(disp, img, mask, disp, img)

    # Final means: divisors match torch .mean() over the sliced tensors.
    n_x = B * H * (W - 1)
    n_y = B * (H - 1) * W
    return (jnp.sum(partial_sums[:, :, 0]) / n_x
            + jnp.sum(partial_sums[:, :, 1]) / n_y)


def _reference(disp, img, mask):
    d = disp.astype(jnp.float32)
    im = img.astype(jnp.float32)
    m = mask.astype(jnp.float32)
    gdx = jnp.abs(d[:, :, :, :-1] - d[:, :, :, 1:])
    gdy = jnp.abs(d[:, :, :-1, :] - d[:, :, 1:, :])
    gix = jnp.mean(jnp.abs(im[:, :, :, :-1] - im[:, :, :, 1:]), axis=1, keepdims=True)
    giy = jnp.mean(jnp.abs(im[:, :, :-1, :] - im[:, :, 1:, :]), axis=1, keepdims=True)
    gdx = gdx * jnp.exp(-gix)
    gdy = gdy * jnp.exp(-giy)
    return jnp.mean(gdx * m[:, :, :, :-1]) + jnp.mean(gdy * m[:, :, :-1, :])


if __name__ == "__main__":
    key = jax.random.PRNGKey(0)
    ks = jax.random.split(key, 9)

    # Case 1: documented small layout; f32 disp/img, int8 mask (narrow HBM dtype).
    B, C, H, W = 2, 1, 16, 16
    disp = jax.random.uniform(ks[0], (B, C, H, W), dtype=jnp.float32)
    img = jax.random.uniform(ks[1], (B, C, H, W), dtype=jnp.float32)
    mask = (jax.random.uniform(ks[2], (B, C, H, W)) > 0.3).astype(jnp.int8)
    out = jax.block_until_ready(depth_smooth_loss(disp, img, mask))
    ref = jax.block_until_ready(_reference(disp, img, mask))
    assert jnp.allclose(out, ref, atol=1e-5, rtol=1e-5), (out, ref)

    # Case 2: H, W not multiples of 8/128, several H tiles + ragged last tile
    # (exercises the halo seam and the select-masked out-of-bounds rows).
    B2, H2, W2 = 2, 50, 40
    disp2 = jax.random.uniform(ks[3], (B2, 1, H2, W2), dtype=jnp.float32)
    img2 = jax.random.uniform(ks[4], (B2, 1, H2, W2), dtype=jnp.float32)
    mask2 = (jax.random.uniform(ks[5], (B2, 1, H2, W2)) > 0.3).astype(jnp.int8)
    out2 = jax.block_until_ready(depth_smooth_loss(disp2, img2, mask2, tile_h=32))
    ref2 = jax.block_until_ready(_reference(disp2, img2, mask2))
    assert jnp.allclose(out2, ref2, atol=1e-5, rtol=1e-5), (out2, ref2)

    # Case 3: bf16 disp/img, B == 1 (the parallel H axis alone supplies the
    # >=2 parallel grid steps a v7x megacore wants), multiple H tiles.
    B3, H3, W3 = 1, 64, 48
    disp3 = jax.random.uniform(ks[6], (B3, 1, H3, W3), dtype=jnp.bfloat16)
    img3 = jax.random.uniform(ks[7], (B3, 1, H3, W3), dtype=jnp.bfloat16)
    mask3 = (jax.random.uniform(ks[8], (B3, 1, H3, W3)) > 0.3).astype(jnp.int8)
    out3 = jax.block_until_ready(depth_smooth_loss(disp3, img3, mask3, tile_h=32))
    ref3 = jax.block_until_ready(_reference(disp3, img3, mask3))
    assert jnp.allclose(out3, ref3, atol=1e-4, rtol=1e-4), (out3, ref3)

    print("KERNEL_OK")
</pallas_src>

<mosaic_0001>
module attributes {stable_mosaic.version = 11 : i64} {
  func.func @_depth_smooth_kernel(%arg0: i32, %arg1: i32, %arg2: memref<1x1x16x16xf32, #tpu.memory_space<vmem>>, %arg3: memref<1x1x16x16xf32, #tpu.memory_space<vmem>>, %arg4: memref<1x1x16x16xi8, #tpu.memory_space<vmem>>, %arg5: memref<1x1x8x16xf32, #tpu.memory_space<vmem>>, %arg6: memref<1x1x8x16xf32, #tpu.memory_space<vmem>>, %arg7: memref<1x1x2xf32, #tpu.memory_space<smem>>) attributes {dimension_semantics = [#tpu.dimension_semantics<parallel>, #tpu.dimension_semantics<parallel>], iteration_bounds = array<i64: 2, 1>, scalar_prefetch = 0 : i64, scratch_operands = 0 : i64, tpu.core_type = #tpu.core_type<tc>, window_params = [{transform_indices = @transform_0, window_bounds = array<i64: 1, 1, 16, 16>}, {transform_indices = @transform_1, window_bounds = array<i64: 1, 1, 16, 16>}, {transform_indices = @transform_2, window_bounds = array<i64: 1, 1, 16, 16>}, {transform_indices = @transform_3, window_bounds = array<i64: 1, 1, 8, 16>}, {transform_indices = @transform_4, window_bounds = array<i64: 1, 1, 8, 16>}, {transform_indices = @transform_5, window_bounds = array<i64: 1, 1, 2>}]} {
    %c0 = arith.constant 0 : index
    %c0_0 = arith.constant 0 : index
    %c0_1 = arith.constant 0 : index
    %c0_2 = arith.constant 0 : index
    %0 = vector.load %arg2[%c0, %c0_0, %c0_1, %c0_2] : memref<1x1x16x16xf32, #tpu.memory_space<vmem>>, vector<1x1x16x16xf32>
    %1 = vector.shape_cast %0 : vector<1x1x16x16xf32> to vector<16x16xf32>
    %c0_3 = arith.constant 0 : index
    %c0_4 = arith.constant 0 : index
    %c0_5 = arith.constant 0 : index
    %c0_6 = arith.constant 0 : index
    %2 = vector.load %arg3[%c0_3, %c0_4, %c0_5, %c0_6] : memref<1x1x16x16xf32, #tpu.memory_space<vmem>>, vector<1x1x16x16xf32>
    %3 = vector.shape_cast %2 : vector<1x1x16x16xf32> to vector<16x16xf32>
    %c0_7 = arith.constant 0 : index
    %c0_8 = arith.constant 0 : index
    %c0_9 = arith.constant 0 : index
    %c0_10 = arith.constant 0 : index
    %4 = vector.load %arg4[%c0_7, %c0_8, %c0_9, %c0_10] : memref<1x1x16x16xi8, #tpu.memory_space<vmem>>, vector<1x1x16x16xi8>
    %5 = vector.shape_cast %4 : vector<1x1x16x16xi8> to vector<16x16xi8>
    %6 = arith.sitofp %5 : vector<16x16xi8> to vector<16x16xf32>
    %7 = tpu.iota {dimensions = array<i32: 0>} : vector<16x1xi32>
    %c16_i32 = arith.constant 16 : i32
    %8 = arith.muli %arg1, %c16_i32 : i32
    %9 = vector.broadcast %8 : i32 to vector<16x1xi32>
    %10 = arith.addi %7, %9 : vector<16x1xi32>
    %11 = vector.extract_strided_slice %1 {offsets = [0, 0], sizes = [16, 15], strides = [1, 1]} : vector<16x16xf32> to vector<16x15xf32>
    %12 = vector.extract_strided_slice %1 {offsets = [0, 1], sizes = [16, 15], strides = [1, 1]} : vector<16x16xf32> to vector<16x15xf32>
    %13 = arith.subf %11, %12 : vector<16x15xf32>
    %14 = math.absf %13 : vector<16x15xf32>
    %15 = vector.extract_strided_slice %3 {offsets = [0, 0], sizes = [16, 15], strides = [1, 1]} : vector<16x16xf32> to vector<16x15xf32>
    %16 = vector.extract_strided_slice %3 {offsets = [0, 1], sizes = [16, 15], strides = [1, 1]} : vector<16x16xf32> to vector<16x15xf32>
    %17 = arith.subf %15, %16 : vector<16x15xf32>
    %18 = math.absf %17 : vector<16x15xf32>
    %cst = arith.constant 0.000000e+00 : f32
    %19 = vector.broadcast %cst : f32 to vector<16x15xf32>
    %20 = arith.subf %19, %18 : vector<16x15xf32>
    %21 = math.exp %20 : vector<16x15xf32>
    %22 = arith.mulf %14, %21 : vector<16x15xf32>
    %23 = vector.extract_strided_slice %6 {offsets = [0, 0], sizes = [16, 15], strides = [1, 1]} : vector<16x16xf32> to vector<16x15xf32>
    %24 = arith.mulf %22, %23 : vector<16x15xf32>
    %c16_i32_11 = arith.constant 16 : i32
    %25 = vector.broadcast %c16_i32_11 : i32 to vector<16x1xi32>
    %26 = arith.cmpi slt, %10, %25 : vector<16x1xi32>
    %cst_12 = arith.constant 0.000000e+00 : f32
    %27 = vector.shape_cast %26 : vector<16x1xi1> to vector<16x1xi1>
    %28 = vector.broadcast %27 : vector<16x1xi1> to vector<16x15xi1>
    %29 = vector.broadcast %cst_12 : f32 to vector<16x15xf32>
    %30 = arith.select %28, %24, %29 : vector<16x15xi1>, vector<16x15xf32>
    %31 = vector.shape_cast %30 : vector<16x15xf32> to vector<1x16x15xf32>
    %cst_13 = arith.constant dense<0.000000e+00> : vector<1xf32>
    %32 = vector.multi_reduction <add>, %31, %cst_13 [1, 2] : vector<1x16x15xf32> to vector<1xf32>
    %33 = vector.shape_cast %32 : vector<1xf32> to vector<1x1x1xf32>
    %34 = vector.extract %33[0, 0, 0] : f32 from vector<1x1x1xf32>
    %35 = vector.extract_strided_slice %1 {offsets = [0, 0], sizes = [15, 16], strides = [1, 1]} : vector<16x16xf32> to vector<15x16xf32>
    %36 = vector.extract_strided_slice %1 {offsets = [1, 0], sizes = [15, 16], strides = [1, 1]} : vector<16x16xf32> to vector<15x16xf32>
    %37 = arith.subf %35, %36 : vector<15x16xf32>
    %38 = math.absf %37 : vector<15x16xf32>
    %39 = vector.extract_strided_slice %3 {offsets = [0, 0], sizes = [15, 16], strides = [1, 1]} : vector<16x16xf32> to vector<15x16xf32>
    %40 = vector.extract_strided_slice %3 {offsets = [1, 0], sizes = [15, 16], strides = [1, 1]} : vector<16x16xf32> to vector<15x16xf32>
    %41 = arith.subf %39, %40 : vector<15x16xf32>
    %42 = math.absf %41 : vector<15x16xf32>
    %cst_14 = arith.constant 0.000000e+00 : f32
    %43 = vector.broadcast %cst_14 : f32 to vector<15x16xf32>
    %44 = arith.subf %43, %42 : vector<15x16xf32>
    %45 = math.exp %44 : vector<15x16xf32>
    %46 = arith.mulf %38, %45 : vector<15x16xf32>
    %47 = vector.extract_strided_slice %6 {offsets = [0, 0], sizes = [15, 16], strides = [1, 1]} : vector<16x16xf32> to vector<15x16xf32>
    %48 = arith.mulf %46, %47 : vector<15x16xf32>
    %49 = vector.extract_strided_slice %10 {offsets = [0, 0], sizes = [15, 1], strides = [1, 1]} : vector<16x1xi32> to vector<15x1xi32>
    %c15_i32 = arith.constant 15 : i32
    %50 = vector.broadcast %c15_i32 : i32 to vector<15x1xi32>
    %51 = arith.cmpi slt, %49, %50 : vector<15x1xi32>
    %cst_15 = arith.constant 0.000000e+00 : f32
    %52 = vector.shape_cast %51 : vector<15x1xi1> to vector<15x1xi1>
    %53 = vector.broadcast %52 : vector<15x1xi1> to vector<15x16xi1>
    %54 = vector.broadcast %cst_15 : f32 to vector<15x16xf32>
    %55 = arith.select %53, %48, %54 : vector<15x16xi1>, vector<15x16xf32>
    %56 = vector.shape_cast %55 : vector<15x16xf32> to vector<1x15x16xf32>
    %cst_16 = arith.constant dense<0.000000e+00> : vector<1xf32>
    %57 = vector.multi_reduction <add>, %56, %cst_16 [1, 2] : vector<1x15x16xf32> to vector<1xf32>
    %58 = vector.shape_cast %57 : vector<1xf32> to vector<1x1x1xf32>
    %59 = vector.extract %58[0, 0, 0] : f32 from vector<1x1x1xf32>
    %c0_17 = arith.constant 0 : index
    %c0_18 = arith.constant 0 : index
    %c0_19 = arith.constant 0 : index
    %c0_20 = arith.constant 0 : index
    %60 = vector.load %arg5[%c0_17, %c0_18, %c0_19, %c0_20] : memref<1x1x8x16xf32, #tpu.memory_space<vmem>>, vector<1x1x8x16xf32>
    %61 = vector.shape_cast %60 : vector<1x1x8x16xf32> to vector<8x16xf32>
    %62 = vector.extract_strided_slice %61 {offsets = [0, 0], sizes = [1, 16], strides = [1, 1]} : vector<8x16xf32> to vector<1x16xf32>
    %c0_21 = arith.constant 0 : index
    %c0_22 = arith.constant 0 : index
    %c0_23 = arith.constant 0 : index
    %c0_24 = arith.constant 0 : index
    %63 = vector.load %arg6[%c0_21, %c0_22, %c0_23, %c0_24] : memref<1x1x8x16xf32, #tpu.memory_space<vmem>>, vector<1x1x8x16xf32>
    %64 = vector.shape_cast %63 : vector<1x1x8x16xf32> to vector<8x16xf32>
    %65 = vector.extract_strided_slice %64 {offsets = [0, 0], sizes = [1, 16], strides = [1, 1]} : vector<8x16xf32> to vector<1x16xf32>
    %66 = vector.extract_strided_slice %1 {offsets = [15, 0], sizes = [1, 16], strides = [1, 1]} : vector<16x16xf32> to vector<1x16xf32>
    %67 = arith.subf %66, %62 : vector<1x16xf32>
    %68 = math.absf %67 : vector<1x16xf32>
    %69 = vector.extract_strided_slice %3 {offsets = [15, 0], sizes = [1, 16], strides = [1, 1]} : vector<16x16xf32> to vector<1x16xf32>
    %70 = arith.subf %69, %65 : vector<1x16xf32>
    %71 = math.absf %70 : vector<1x16xf32>
    %cst_25 = arith.constant 0.000000e+00 : f32
    %72 = vector.broadcast %cst_25 : f32 to vector<1x16xf32>
    %73 = arith.subf %72, %71 : vector<1x16xf32>
    %74 = math.exp %73 : vector<1x16xf32>
    %75 = arith.mulf %68, %74 : vector<1x16xf32>
    %76 = vector.extract_strided_slice %6 {offsets = [15, 0], sizes = [1, 16], strides = [1, 1]} : vector<16x16xf32> to vector<1x16xf32>
    %77 = arith.mulf %75, %76 : vector<1x16xf32>
    %c16_i32_26 = arith.constant 16 : i32
    %78 = arith.muli %arg1, %c16_i32_26 : i32
    %c15_i32_27 = arith.constant 15 : i32
    %79 = arith.addi %78, %c15_i32_27 : i32
    %c15_i32_28 = arith.constant 15 : i32
    %80 = arith.cmpi slt, %79, %c15_i32_28 : i32
    %81 = vector.shape_cast %77 : vector<1x16xf32> to vector<1x1x16xf32>
    %cst_29 = arith.constant dense<0.000000e+00> : vector<1xf32>
    %82 = vector.multi_reduction <add>, %81, %cst_29 [1, 2] : vector<1x1x16xf32> to vector<1xf32>
    %83 = vector.shape_cast %82 : vector<1xf32> to vector<1x1x1xf32>
    %84 = vector.extract %83[0, 0, 0] : f32 from vector<1x1x1xf32>
    %cst_30 = arith.constant 0.000000e+00 : f32
    %85 = arith.select %80, %84, %cst_30 : f32
    %86 = arith.addf %59, %85 : f32
    %c0_31 = arith.constant 0 : index
    %c0_32 = arith.constant 0 : index
    %c0_33 = arith.constant 0 : index
    %87 = memref.load %arg7[%c0_31, %c0_32, %c0_33] : memref<1x1x2xf32, #tpu.memory_space<smem>>
    memref.store %34, %arg7[%c0_31, %c0_32, %c0_33] : memref<1x1x2xf32, #tpu.memory_space<smem>>
    %c0_34 = arith.constant 0 : index
    %c0_35 = arith.constant 0 : index
    %c1 = arith.constant 1 : index
    %88 = memref.load %arg7[%c0_34, %c0_35, %c1] : memref<1x1x2xf32, #tpu.memory_space<smem>>
    memref.store %86, %arg7[%c0_34, %c0_35, %c1] : memref<1x1x2xf32, #tpu.memory_space<smem>>
    return
  }
  func.func @transform_0(%arg0: i32, %arg1: i32) -> (i32, i32, i32, i32) {
    %c0_i32 = arith.constant 0 : i32
    %c0_i32_0 = arith.constant 0 : i32
    %c0_i32_1 = arith.constant 0 : i32
    return %arg0, %c0_i32, %arg1, %c0_i32_0 : i32, i32, i32, i32
  }
  func.func @transform_1(%arg0: i32, %arg1: i32) -> (i32, i32, i32, i32) {
    %c0_i32 = arith.constant 0 : i32
    %c0_i32_0 = arith.constant 0 : i32
    %c0_i32_1 = arith.constant 0 : i32
    return %arg0, %c0_i32, %arg1, %c0_i32_0 : i32, i32, i32, i32
  }
  func.func @transform_2(%arg0: i32, %arg1: i32) -> (i32, i32, i32, i32) {
    %c0_i32 = arith.constant 0 : i32
    %c0_i32_0 = arith.constant 0 : i32
    %c0_i32_1 = arith.constant 0 : i32
    return %arg0, %c0_i32, %arg1, %c0_i32_0 : i32, i32, i32, i32
  }
  func.func @transform_3(%arg0: i32, %arg1: i32) -> (i32, i32, i32, i32) {
    %c1_i32 = arith.constant 1 : i32
    %0 = arith.addi %arg1, %c1_i32 : i32
    %c2_i32 = arith.constant 2 : i32
    %1 = arith.muli %0, %c2_i32 : i32
    %c1_i32_0 = arith.constant 1 : i32
    %2 = arith.minsi %1, %c1_i32_0 : i32
    %c0_i32 = arith.constant 0 : i32
    %c0_i32_1 = arith.constant 0 : i32
    %c0_i32_2 = arith.constant 0 : i32
    return %arg0, %c0_i32, %2, %c0_i32_1 : i32, i32, i32, i32
  }
  func.func @transform_4(%arg0: i32, %arg1: i32) -> (i32, i32, i32, i32) {
    %c1_i32 = arith.constant 1 : i32
    %0 = arith.addi %arg1, %c1_i32 : i32
    %c2_i32 = arith.constant 2 : i32
    %1 = arith.muli %0, %c2_i32 : i32
    %c1_i32_0 = arith.constant 1 : i32
    %2 = arith.minsi %1, %c1_i32_0 : i32
    %c0_i32 = arith.constant 0 : i32
    %c0_i32_1 = arith.constant 0 : i32
    %c0_i32_2 = arith.constant 0 : i32
    return %arg0, %c0_i32, %2, %c0_i32_1 : i32, i32, i32, i32
  }
  func.func @transform_5(%arg0: i32, %arg1: i32) -> (i32, i32, i32) {
    %c0_i32 = arith.constant 0 : i32
    %c0_i32_0 = arith.constant 0 : i32
    return %arg0, %arg1, %c0_i32 : i32, i32, i32
  }
}

</mosaic_0001>

<bundles_post_ra>
// kernel: tpu_custom_call.1
= control target key start
LH: loop header
LB: loop body
LE: loop exit
PB: predicated region body
PF: predicated region fallthrough
CT: control target
= control target key end

     0   :  { %s1423_s0 = inlined_call_operand.hbm [shape: f32[2,1,16,16], index: 0, kind: input, shape index: {}]   ;;  %s1424_s1 = inlined_call_operand.hbm [shape: f32[2,1,16,16], index: 1, kind: input, shape index: {}]   ;;  %s1425_s2 = inlined_call_operand.hbm [shape: s8[2,1,16,16], index: 2, kind: input, shape index: {}]   ;;  %s1426_s3 = inlined_call_operand.hbm [shape: f32[2,1,16,16], index: 3, kind: input, shape index: {}]   ;;  %s1427_s4 = inlined_call_operand.hbm [shape: f32[2,1,16,16], index: 4, kind: input, shape index: {}]   ;;  %s1428_s5 = inlined_call_operand.hbm [shape: f32[2,1,2], index: 5, kind: output, shape index: {}]  }
   0x1   :  { %1440 = sst [smem:[#allocation24_spill]] %s1424_s1 }
   0x2   :  { %1441 = sst [smem:[#allocation25_spill]] %s1426_s3 }
   0x3   :  { %1442 = sst [smem:[#allocation26_spill]] %s1428_s5 }
   0x4   :  { %10 = vsyncpa [#allocation3], 0 }
   0x5   :  { %12 = vsyncpa [#allocation3 + $0x1], 0 }
   0x6   :  { %13 = vsyncpa [#allocation6], 0 }
   0x7   :  { %15 = vsyncpa [#allocation6 + $0x1], 0 }
   0x8   :  { %16 = vsyncpa [#allocation9], 0 }
   0x9   :  { %18 = vsyncpa [#allocation9 + $0x1], 0 }
   0xa   :  { %19 = vsyncpa [#allocation4], 0 }
   0xb   :  { %21 = vsyncpa [#allocation4 + $0x1], 0  ;;  %s1223_s18 = smov 0   ;;  %s1225_s19 = smov 0  }
   0xc   :  { %s1227_s20 = smov 0   ;;  %s1229_s21 = smov 0  }
   0xd   :  { %s1231_s22 = smov 0   ;;  %s1233_s23 = smov 0  }
   0xe LB: > { %1443 = sst [smem:[#allocation16_spill]] %s1166_s18  ;;  %s1254_s24 = sadd.s32 4294967295, %s1186_s23   ;;  %s1186_s23 = sphi %s1233_s23, %s27_s23   ;;  %s1182_s22 = sphi %s1231_s22, %s1474_s22   ;;  %s1178_s21 = sphi %s1229_s21, %s1473_s21   ;;  %s1174_s20 = sphi %s1227_s20, %s1469_s20   ;;  %s1170_s19 = sphi %s1225_s19, %s1472_s19   ;;  %s1166_s18 = sphi %s1223_s18, %s1471_s18  }
   0xf   : > { %1444 = sst [smem:[#allocation17_spill]] %s1174_s20  ;;  %s825_s25 = sadd.s32 4294967294, %s1186_s23  }
  0x10   : > { %1445 = sst [smem:[#allocation18_spill]] %s1178_s21  ;;  %s39_s26 = sadd.s32 1, %s1182_s22 }
  0x11   : > { %1446 = sst [smem:[#allocation19_spill]] %s1186_s23  ;;  %s48_s27 = sadd.s32 1, %s1174_s20 }
  0x12   : > { %p41_p0 = scmp.ge.s32.totalorder %s39_s26, 2  ;;  %p55_p1 = scmp.ne.s32.totalorder %s1174_s20, %s1170_s19 }
  0x13   : > { %p56_p2 = scmp.eq.s32.totalorder %s1186_s23, 0  ;;  %p61_p3 = scmp.ne.s32.totalorder %s1170_s19, %s1166_s18 }
  0x14   : > { %s1476_s26 = smov (%p41_p0, %s39_s26), 0  ;;  %p62_p5 = scmp.eq.s32.totalorder %s1254_s24, 0 }
  0x15   : > { %1447 = sst [smem:[#allocation20_spill]] %s1476_s26  ;;  %p1266_p4 = por %p56_p2, %p55_p1 }
  0x16   : > { %s43_s29 = ssub.s32 %s1182_s22, %s1476_s26  ;;  %p215_p6 = scmp.eq.s32.totalorder %s1254_s24, 1 }
  0x17   : > { %p46_p7 = scmp.eq.s32.totalorder %s43_s29, 0  ;;  %p1274_p8 = por %p62_p5, %p61_p3 }
  0x18   : > { %p1278_p9 = por %p215_p6, %p55_p1  ;;  %p221_p10 = scmp.eq.s32.totalorder %s825_s25, 1 }
  0x19   : > { %s1283_s7 = scalar_select %p46_p7, %s1174_s20, %s48_s27  }
  0x1a   : > { %s1450_s6 = scalar_select %p1278_p9, 1, 0 }
  0x1b   : > { %1452 = sst [smem:[#allocation22_spill]] %s1283_s7  ;;  %p1285_p11 = por %p221_p10, %p61_p3 }
  0x1c   : > { %1451 = sst [smem:[#allocation21_spill]] %s1450_s6  ;;  %p898_p12 = scmp.lt.s32.totalorder %s1186_s23, 2 }
  0x1d   : > { %s1453_s8 = scalar_select %p1285_p11, 1, 0 }
  0x1e   : > { %s1291_s9 = sand.u32 1, %s1174_s20   ;;  %s1295_s11 = sshll.u32 %s1182_s22, 4 }
  0x1f   : > { %1454 = sst [smem:[#allocation23_spill]] %s1453_s8  ;;  %s1430_s10 = sshll.u32 %s1291_s9, 4 }
  0x20   : > { %p1301_p13 = pnand %p898_p12, %p1266_p4  ;;  %s265_s13 = sand.u32 1, %s1186_s23  }
  0x21   : > { %s1456_s1 = sld [smem:[#allocation24_spill]]  ;;  %s269_s25 = scalar_lea.vmem [#allocation5], %s1430_s10 }
  0x22   : > { %s279_s27 = sshll.u32 %s269_s25, 4  ;;  %s1312_s28 = scalar_lea.sflag [#allocation6], %s265_s13  ;;  %s280_s27 = int_to_ptr.vmem [resolvable:$true] %s279_s27 }
  0x23   : > { %s1188_s29 = smov 128   ;;  %s1189_s26 = smov 8  }
  0x24   : > { %p843_p0 = scmp.ge.s32.totalorder %s1186_s23, 1  ;;  %p361_p1 = scmp.lt.s32.totalorder %s1186_s23, 3 }
  0x25   : > { %s1437_s14 = sshll.u32 %s1291_s9, 3  ;;  %s1458_s3 = sld [smem:[#allocation25_spill]] }
  0x26   : > { %p1320_p2 = pnand %p843_p0, %p361_p1  ;;  %s317_s25 = scalar_lea.vmem [#allocation8], %s1437_s14 }
  0x27   : > { %s276_s16 = scalar_lea.hbm %s1456_s1, %s1295_s11  ;;  %s331_s10 = sshll.u32 %s317_s25, 4  ;;  %s332_s10 = int_to_ptr.vmem [resolvable:$true] %s331_s10 }
  0x28   : > { %s277_s17 = sshll.u32 %s276_s16, 4  ;;  %s857_s16 = sadd.s32 8, %s1295_s11  ;;  %s278_s17 = int_to_ptr.hbm [resolvable:$true] %s277_s17 }
  0x29   : > { %888 = dma.hbm_to_vmem [thread:$0]  (!%p1301_p13), %s278_s17, 256, %s280_s27, %s1312_s28, %s1188_s29, %s1188_s29, %s1189_s26  }
  0x2a   : > { %s352_s18 = scalar_lea.hbm %s1427_s4, %s857_s16  ;;  %s314_s23 = scalar_lea.sflag [#allocation9], %s265_s13 }
  0x2b   : > { %s327_s20 = scalar_lea.hbm %s1458_s3, %s857_s16  ;;  %s252_s25 = scalar_lea.hbm %s1423_s0, %s1295_s11 }
  0x2c   : > { %s329_s17 = sshll.u32 %s327_s20, 4  ;;  %s1459_s6 = sshll.u32 %s1291_s9, 4  ;;  %s330_s17 = int_to_ptr.hbm [resolvable:$true] %s329_s17 }
  0x2d   : > { %894 = dma.hbm_to_vmem [thread:$0]  (!%p1301_p13), %s330_s17, 128, %s332_s10, %s314_s23  }
  0x2e   : > { %s245_s21 = scalar_lea.vmem [#allocation2], %s1459_s6  ;;  %s253_s7 = sshll.u32 %s252_s25, 4  ;;  %s254_s7 = int_to_ptr.hbm [resolvable:$true] %s253_s7 }
  0x2f   : > { %s255_s1 = sshll.u32 %s245_s21, 4  ;;  %s834_s20 = sshll.u32 %s1291_s9, 2  ;;  %s256_s1 = int_to_ptr.vmem [resolvable:$true] %s255_s1 }
  0x30   : > { %s242_s3 = scalar_lea.sflag [#allocation3], %s1291_s9  ;;  %s855_s8 = sshll.u32 %s1182_s22, 2 }
  0x31   : > { %885 = dma.hbm_to_vmem [thread:$0]  (!%p1301_p13), %s254_s7, 256, %s256_s1, %s242_s3, %s1188_s29, %s1188_s29, %s1189_s26  }
  0x32   : > { %s300_s5 = scalar_lea.hbm %s1425_s2, %s855_s8  ;;  %s293_s11 = scalar_lea.vmem [#allocation7], %s834_s20 }
  0x33   : > { %s303_s14 = sshll.u32 %s293_s11, 4  ;;  %s301_s6 = sshll.u32 %s300_s5, 4  ;;  %s304_s14 = int_to_ptr.vmem [resolvable:$true] %s303_s14  ;;  %s302_s6 = int_to_ptr.hbm [resolvable:$true] %s301_s6 }
  0x34   : > { %s354_s21 = sshll.u32 %s352_s18, 4  ;;  %s1190_s16 = smov 32   ;;  %s355_s21 = int_to_ptr.hbm [resolvable:$true] %s354_s21 }
  0x35   : > { %s1191_s17 = smov 2   ;;  %s1460_s27 = sshll.u32 %s1291_s9, 3 }
  0x36   : > { %891 = dma.hbm_to_vmem [thread:$0]  (!%p1301_p13), %s302_s6, 64, %s304_s14, %s1312_s28, %s1190_s16, %s1190_s16, %s1191_s17  }
  0x37   : > { %s342_s25 = scalar_lea.vmem [#allocation10], %s1460_s27  ;;  %365 = sbr.rel (%p1320_p2) target bundleno = 402 (0x192), region = 40 }
  0x38   : > { %s356_s3 = sshll.u32 %s342_s25, 4  ;;  %s1359_s26 = sand.u32 (!%p1320_p2), 1, %s1170_s19   ;;  %s357_s3 = int_to_ptr.vmem [resolvable:$true] %s356_s3 }
  0x39   : > { %897 = dma.hbm_to_vmem [thread:$0]  (!%p1301_p13), %s355_s21, 128, %s357_s3, %s314_s23  }
  0x3a   : > { %s844_s18 = sshll.u32 (!%p1320_p2), %s1359_s26, 4  ;;  %s368_s29 = scalar_lea.sflag (!%p1320_p2), [#allocation3], %s1359_s26 }
  0x3b   : > { %s371_s1 = scalar_lea.vmem (!%p1320_p2), [#allocation2], %s844_s18 }
  0x3c   : > { %1149 = dma.done.wait (%p1274_p8), %s368_s29, 256  }
  0x3d   : > { %1151 = vsyncadd (%p1274_p8), %s368_s29, 4294967040  ;;  %s377_s23 = sand.u32 1, %s1254_s24   ;;  %s381_s12 = scalar_lea.vmem [#allocation5], %s844_s18 }
  0x3e   : > { %s378_s9 = scalar_lea.sflag [#allocation6], %s377_s23 }
  0x3f   : > { %1153 = dma.done.wait (%p1274_p8), %s378_s9, 320  }
  0x40   : > { %1155 = vsyncadd (%p1274_p8), %s378_s9, 4294966976  ;;  %s846_s28 = sshll.u32 %s1359_s26, 2  ;;  %s398_s7 = scalar_lea.sflag [#allocation9], %s377_s23 }
  0x41   : > { %s1373_s15 = scalar_lea.vmem [#allocation7], %s846_s28 }
  0x42   : > { %1157 = dma.done.wait (%p1274_p8), %s398_s7, 256  }
  0x43   : > { %1159 = vsyncadd (%p1274_p8), %s398_s7, 4294967040  ;;  %v472_v0 = vld [vmem:[%s381_s12] sm:$0xff]  ;;  %s1192_s24 = smov 127   ;;  %v473_v2 = vld [vmem:[%s381_s12 + $0x8] sm:$0xff]  ;;  %vm542_vm0 = vcmask 1046528   ;;  %v480_v32 = vlaneseq  ;;  %vm529_vm1 = vcmask 121856  }
  0x44   : > { %v470_v1 = vld [vmem:[%s371_s1] sm:$0xff]  ;;  %501 = vrot.lane.b32.xlu0 %v472_v0, %s1192_s24  ;;  %v471_v3 = vld [vmem:[%s371_s1 + $0x8] sm:$0xff]  ;;  %v552_v4 = vrot.slane %v472_v0, 1  ;;  %v553_v5 = vrot.slane %v473_v2, 1  ;;  %vm579_vm3 = vcmask 130048   ;;  %vm581_vm4 = vcmask 129024  }
  0x45   : > { %489 = vrot.lane.b32.xlu1 %v470_v1, %s1192_s24  ;;  %v543_v21 = vrot.slane %v470_v1, 1  ;;  %v544_v22 = vrot.slane %v471_v3, 1  ;;  %v863_v30 = vld [vmem:[%s1373_s15] sm:$0xf]   ;;  %v481_v42 = vshrl.u32 %v480_v32, 7  ;;  %s1461_s30 = sld [smem:[#allocation18_spill]] }
  0x46   : > { %v558_v6 = vsub.f32 %v473_v2, %v553_v5  ;;  %v554_v7 = vsel %vm542_vm0, %v552_v4, %v553_v5  ;;  %v864_v36 = vunpack.c.0.s8 %v863_v30  ;;  %v865_v41 = vunpack.c.1.s8 %v863_v30  ;;  %s849_s8 = sshll.u32 %s1359_s26, 7  ;;  %s1463_s14 = sld [smem:[#allocation26_spill]] }
  0x47   : > { %v557_v8 = vsub.f32 %v472_v0, %v554_v7  ;;  %v549_v27 = vsub.f32 %v471_v3, %v544_v22  ;;  %v545_v31 = vsel %vm542_vm0, %v543_v21, %v544_v22  ;;  %v482_v50 = vadd.s32 8, %v481_v42  ;;  %s458_s13 = scalar_lea.smem [#allocation11], %s849_s8  ;;  %s633_s27 = scalar_lea.sflag [#allocation4], %s1359_s26 }
  0x48   : > { %v560_v9 = vand.u32 2147483647, %v558_v6  ;;  %v548_v37 = vsub.f32 %v470_v1, %v545_v31  ;;  %v478_v45 = vcvt.s32.f32 %v864_v36  ;;  %v479_v49 = vcvt.s32.f32 %v865_v41  ;;  %s630_s16 = scalar_lea.smem %s458_s13, 1 [#allocation11] }
  0x49   : > { %v559_v12 = vand.u32 2147483647, %v557_v8  ;;  %v551_v39 = vand.u32 2147483647, %v549_v27  ;;  %vm572_vm2 = vcmp.lt.s32.totalorder %v482_v50, 15 }
  0x4a   : > { %v562_v15 = vsub.f32 0.0, %v560_v9  ;;  %v550_v46 = vand.u32 2147483647, %v548_v37 }
  0x4b   : > { %v561_v17 = vsub.f32 0.0, %v559_v12 }
  0x4c   : > { %503 = vrot.lane.b32.xlu0 %v473_v2, %s1192_s24  ;;  %v565_v19 = vmul.f32 1.442695, %v562_v15  ;;  %s643_s6 = scalar_lea.hbm %s1463_s14, %s1461_s30  ;;  %s1116_s1 = scalar_lea.hbm %s1463_s14, 2 }
  0x4d   : > { %491 = vrot.lane.b32.xlu1 %v471_v3, %s1192_s24  ;;  %v563_v25 = vmul.f32 1.442695, %v561_v17  ;;  %s645_s21 = sshll.u32 %s643_s6, 4  ;;  %s646_s21 = int_to_ptr.hbm [resolvable:$true] %s645_s21 }
  0x4e   : > { %s1110_s25 = sshra.s32 %s646_s21, 4  ;;  %s1111_s25 = int_to_ptr.hbm [resolvable:$true] %s1110_s25 }
  0x4f   : > { %s1112_s3 = scalar_lea.hbm %s1111_s25, 1  ;;  %p1117_p6 = scmp.lt.s32.totalorder %s1111_s25, %s1463_s14 }
  0x50   : > { %p1113_p3 = scmp.ne.s32.totalorder %s1111_s25, %s1112_s3  ;;  %p1118_p7 = scmp.lt.s32.totalorder %s1116_s1, %s1112_s3 }
  0x52   : > { %p1114_p4 = pnand %p1113_p3, %p1278_p9  ;;  %p1119_p8 = por %p1118_p7, %p1117_p6 }
  0x54   : > { %p1115_p5 = pneg %p1114_p4 }
  0x56   : > { %p1120_p10 = pnand %p1119_p8, %p1115_p5 }
  0xb6   : > { %v502_v10 = vpop.permute.xlu0 %501 }
  0xb7   : > { %v507_v11 = vsub.f32 %v472_v0, %v502_v10  ;;  %v490_v14 = vpop.permute.xlu1 %489 }
  0xb8   : > { %v495_v26 = vsub.f32 %v470_v1, %v490_v14 }
  0xb9   : > { %v509_v13 = vand.u32 2147483647, %v507_v11 }
  0xba   : > { %v497_v34 = vand.u32 2147483647, %v495_v26 }
  0xbb   : > { %v511_v16 = vsub.f32 0.0, %v509_v13 }
  0xbd   : > { %v513_v18 = vmul.f32 1.442695, %v511_v16 }
  0xbe   : > { %v504_v20 = vpop.permute.xlu0 %503 }
  0xbf   : > { %v508_v23 = vsub.f32 %v473_v2, %v504_v20  ;;  %952 = vpow2.f32 %v513_v18  ;;  %v492_v29 = vpop.permute.xlu1 %491 }
  0xc0   : > { %954 = vpow2.f32 %v565_v19  ;;  %v496_v35 = vsub.f32 %v471_v3, %v492_v29 }
  0xc1   : > { %v510_v24 = vand.u32 2147483647, %v508_v23  ;;  %956 = vpow2.f32 %v563_v25 }
  0xc2   : > { %v498_v44 = vand.u32 2147483647, %v496_v35 }
  0xc3   : > { %v512_v28 = vsub.f32 0.0, %v510_v24 }
  0xc5   : > { %v515_v33 = vmul.f32 1.442695, %v512_v28  ;;  %v953_v38 = vpop.eup %952 }
  0xc6   : > { %v955_v40 = vpop.eup %954  ;;  %v517_v43 = vmul.f32 %v953_v38, %v497_v34 }
  0xc7   : > { %958 = vpow2.f32 %v515_v33  ;;  %v957_v47 = vpop.eup %956  ;;  %v568_v48 = vmul.f32 %v955_v40, %v551_v39 }
  0xc8   : > { %v519_v53 = vmul.f32 %v517_v43, %v478_v45  ;;  %v567_v54 = vmul.f32 %v957_v47, %v550_v46 }
  0xc9   : > { %v570_v55 = vmul.f32 %v568_v48, %v479_v49 }
  0xca   : > { %v530_v57 = vsel %vm529_vm1, %v519_v53, 0.0  ;;  %v569_v59 = vmul.f32 %v567_v54, %v478_v45 }
  0xcb   : > { %v578_v61 = vsel %vm572_vm2, %v570_v55, 0.0 }
  0xcc   : > { %v580_v62 = vsel %vm579_vm3, %v569_v59, 0.0  ;;  %v582_v63 = vsel %vm581_vm4, %v578_v61, 0.0 }
  0xcd   : > { %v959_v51 = vpop.eup %958  ;;  %v583_v0 = vadd.f32 %v582_v63, %v580_v62 }
  0xce   : > { %v518_v52 = vmul.f32 %v959_v51, %v498_v44 }
  0xd0   : > { %v520_v56 = vmul.f32 %v518_v52, %v479_v49 }
  0xd2   : > { %v531_v58 = vsel %vm529_vm1, %v520_v56, 0.0 }
  0xd3   : > { %v532_v60 = vadd.f32 %v531_v58, %v530_v57 }
  0xd5   : > { %533 = vadd.xlane.f32.xlu2 %v532_v60 }
  0xdd   : > { %584 = vadd.xlane.f32.xlu2 %v583_v0 }
 0x148   : > { %v534_v1 = vpop.xlane.xlu2 %533 }
 0x149   : > { %v535_v2 = vrot.slane %v534_v1, 4 }
 0x14b   : > { %v536_v3 = vadd.f32 %v535_v2, %v534_v1 }
 0x14d   : > { %v537_v4 = vrot.slane %v536_v3, 2 }
 0x14f   : > { %v538_v5 = vadd.f32 %v537_v4, %v536_v3 }
 0x150   : > { %v585_v6 = vpop.xlane.xlu2 %584 }
 0x151   : > { %v586_v7 = vrot.slane %v585_v6, 4  ;;  %v539_v8 = vrot.slane %v538_v5, 1 }
 0x153   : > { %v587_v9 = vadd.f32 %v586_v7, %v585_v6  ;;  %v540_v10 = vadd.f32 %v539_v8, %v538_v5 }
 0x155   : > { %v588_v11 = vrot.slane %v587_v9, 2  ;;  %866 = vpush %v540_v10 }
 0x157   : > { %v589_v12 = vadd.f32 %v588_v11, %v587_v9 }
 0x159   : > { %v590_v13 = vrot.slane %v589_v12, 1 }
 0x15b   : > { %v591_v14 = vadd.f32 %v590_v13, %v589_v12 }
 0x15d   : > { %868 = vpush %v591_v14 }
 0x186   : > { %s867_s10 = spop %866 }
 0x187   : > { %629 = sst [smem:[%s458_s13]] %s867_s10 }
 0x18e   : > { %s869_s17 = spop %868 }
 0x18f   : > { %631 = sst [smem:[%s630_s16]] %s869_s17 }
 0x190   : > { %1123 = shalt.err (!%p1120_p10)
}
 0x191   : > { %880 = dma.smem_to_hbm (%p1278_p9), %s458_s13, 16, %s646_s21, %s633_s27  }
 0x192 PF: > { %652 = sbr.rel (%p898_p12) target bundleno = 413 (0x19d), region = 68  ;;  %s1465_s12 = sld [smem:[#allocation16_spill]] (!%p898_p12) }
 0x198   : > { %s657_s15 = sand.u32 1, %s1465_s12  }
 0x199   : > { %s658_s7 = scalar_lea.sflag [#allocation4], %s657_s15 }
 0x19a   : > { %1161 = dma.done.wait (%p1285_p11), %s658_s7, 16  }
 0x19b   : > { %1163 = vsyncadd (%p1285_p11), %s658_s7, 4294967280 }
 0x19c   : > { %664 = sfence }
 0x19d PF: > { %s1467_s24 = sld [smem:[#allocation19_spill]]  ;;  %s1471_s18 = smov %s1170_s19 }
 0x19e   : > { %s1468_s30 = sld [smem:[#allocation17_spill]]  ;;  %s1473_s21 = smov %s1182_s22 }
 0x19f   : > { %s1469_s20 = sld [smem:[#allocation22_spill]] }
 0x1a0   : > { %s1470_s8 = sld [smem:[#allocation20_spill]] }
 0x1a3   : > { %s27_s23 = sadd.s32 1, %s1467_s24  }
 0x1a4   : > { %p24_p13 = scmp.ge.s32.totalorder %s27_s23, 4   ;;  %s1472_s19 = smov %s1468_s30 }
 0x1a6   : > { %s1474_s22 = smov %s1470_s8  ;;  %26 = sbr.rel (!%p24_p13) target bundleno = 14 (0xe), region = 135 }
 0x1ab   :  { %665 = vsyncpa [#allocation3], 1 }
 0x1ac   :  { %667 = vsyncpa [#allocation3 + $0x1], 1 }
 0x1ad   :  { %668 = vsyncpa [#allocation6], 1 }
 0x1ae   :  { %670 = vsyncpa [#allocation6 + $0x1], 1 }
 0x1af   :  { %671 = vsyncpa [#allocation9], 1 }
 0x1b0   :  { %673 = vsyncpa [#allocation9 + $0x1], 1 }
 0x1b1   :  { %674 = vsyncpa [#allocation4], 1 }
 0x1b2   :  { %676 = vsyncpa [#allocation4 + $0x1], 1 }

</bundles_post_ra>
